<compile_context>
chip_gen: v7x
topology: tpu7x:2x2x1
jax: 0.10.0
libtpu: 0.0.40
codegen_flags: <defaults>
</compile_context>

<pallas_src>
import jax
import jax.numpy as jnp
from jax.experimental import pallas as pl
from jax.experimental.pallas import tpu as pltpu

_LANES = 128
_SUBLANES = 8
_TARGET_BLOCK_ROWS = 2048      # 2048 rows * 128 lanes = 262144 boxes / block (4 MiB f32 per input)
_VMEM_LIMIT_BYTES = 40 << 20   # above v5e/v6e scoped defaults, inside v7x's 64 MiB physical


def _iou_partial_kernel(pred_ref, tgt_ref, out_ref):
    # pred_ref / tgt_ref: (4, TR, 128) f32, coordinate-major (x, y, w, h).
    px1, py1, pw, ph = pred_ref[0], pred_ref[1], pred_ref[2], pred_ref[3]
    tx1, ty1, tw, th = tgt_ref[0], tgt_ref[1], tgt_ref[2], tgt_ref[3]

    px2 = px1 + pw
    py2 = py1 + ph
    tx2 = tx1 + tw
    ty2 = ty1 + th

    inter_w = jnp.minimum(px2, tx2) - jnp.maximum(px1, tx1)
    inter_h = jnp.minimum(py2, ty2) - jnp.maximum(py1, ty1)
    # Clamp the *product*, exactly like the PyTorch module.
    inter_area = jnp.maximum(inter_w * inter_h, 0.0)

    # Union straight from the stored widths/heights (no x2-x1 recompute).
    union_area = pw * ph + tw * th - inter_area

    # Padded (all-zero) boxes: inter = 0, union = 0 -> iou = 0; no mask needed
    # as long as the wrapper zero-pads (it does).
    iou = inter_area / (union_area + 1e-6)

    # Per-block partial sum over the sublane (row) axis -> (1, 128).
    out_ref[...] = jnp.sum(iou, axis=0, keepdims=True)


def _cdiv(a, b):
    return -(-a // b)


def _round_up(a, m):
    return _cdiv(a, m) * m


@jax.jit
def iou_loss(pred, target):
    """pred, target: float32 arrays of shape [N, 4] in (x, y, w, h) format."""
    assert pred.shape == target.shape and pred.ndim == 2 and pred.shape[1] == 4
    n = pred.shape[0]
    assert n > 0, "IoULoss requires at least one box (mean of empty is undefined)."

    rows = _cdiv(n, _LANES)                        # rows of 128 boxes
    num_blocks = _cdiv(rows, _TARGET_BLOCK_ROWS)   # >= 1
    if num_blocks == 1 and rows > _SUBLANES:
        # Give v7x's two TensorCores something to shard on the parallel axis.
        num_blocks = 2
    block_rows = _round_up(_cdiv(rows, num_blocks), _SUBLANES)
    rows_pad = num_blocks * block_rows
    n_pad = rows_pad * _LANES

    def pack(b):
        # ZERO padding is load-bearing: padded boxes must produce iou == 0.
        b = b.astype(jnp.float32)
        b = jnp.pad(b, ((0, n_pad - n), (0, 0)))           # (n_pad, 4)
        return b.T.reshape(4, rows_pad, _LANES)             # coordinate-major, lane-dense

    pred_p = pack(pred)
    tgt_p = pack(target)

    cost = pl.CostEstimate(
        flops=16 * n_pad,
        transcendentals=0,
        bytes_accessed=pred_p.size * 4 + tgt_p.size * 4 + num_blocks * _LANES * 4,
    )

    partials = pl.pallas_call(
        _iou_partial_kernel,
        out_shape=jax.ShapeDtypeStruct((num_blocks, _LANES), jnp.float32),
        grid_spec=pltpu.PrefetchScalarGridSpec(
            num_scalar_prefetch=0,
            grid=(num_blocks,),
            in_specs=[
                pl.BlockSpec((4, block_rows, _LANES), lambda i: (0, i, 0)),
                pl.BlockSpec((4, block_rows, _LANES), lambda i: (0, i, 0)),
            ],
            out_specs=pl.BlockSpec((1, _LANES), lambda i: (i, 0)),
        ),
        compiler_params=pltpu.CompilerParams(
            dimension_semantics=("parallel",),
            vmem_limit_bytes=_VMEM_LIMIT_BYTES,
            allow_input_fusion=[True, True],
        ),
        cost_estimate=cost,
    )(pred_p, tgt_p)

    # Tiny final reduction + normalization in the wrapper.
    return 1.0 - jnp.sum(partials) / jnp.float32(n)


def _iou_loss_ref(pred, target):
    # Plain-JAX reference mirroring the PyTorch module exactly.
    def convert(b):
        x1, y1 = b[:, 0], b[:, 1]
        x2, y2 = b[:, 0] + b[:, 2], b[:, 1] + b[:, 3]
        return jnp.stack([x1, y1, x2, y2], axis=1)

    p, t = convert(pred), convert(target)
    inter = (jnp.minimum(p[:, 2], t[:, 2]) - jnp.maximum(p[:, 0], t[:, 0])) * (
        jnp.minimum(p[:, 3], t[:, 3]) - jnp.maximum(p[:, 1], t[:, 1]))
    inter = jnp.maximum(inter, 0.0)
    union = (p[:, 2] - p[:, 0]) * (p[:, 3] - p[:, 1]) + \
            (t[:, 2] - t[:, 0]) * (t[:, 3] - t[:, 1]) - inter
    iou = inter / (union + 1e-6)
    return 1.0 - iou.mean()


def _make_boxes(key, n):
    k1, k2 = jax.random.split(key)
    xy = jax.random.uniform(k1, (n, 2), jnp.float32) * 10.0
    wh = 1.0 + jax.random.uniform(k2, (n, 2), jnp.float32) * 4.0
    return jnp.concatenate([xy, wh], axis=1)


if __name__ == "__main__":
    key = jax.random.PRNGKey(0)

    # Small case (single block).
    kp, kt, key = jax.random.split(key, 3)
    pred_s = _make_boxes(kp, 8)
    target_s = _make_boxes(kt, 8)
    loss_s = jax.block_until_ready(iou_loss(pred_s, target_s))
    ref_s = _iou_loss_ref(pred_s, target_s)
    assert jnp.allclose(loss_s, ref_s, atol=1e-5, rtol=1e-5), (loss_s, ref_s)

    # Slightly larger ragged case (exercises zero-padding + the 2-block path).
    kp, kt, key = jax.random.split(key, 3)
    pred_l = _make_boxes(kp, 1500)
    target_l = _make_boxes(kt, 1500)
    loss_l = jax.block_until_ready(iou_loss(pred_l, target_l))
    ref_l = _iou_loss_ref(pred_l, target_l)
    assert jnp.allclose(loss_l, ref_l, atol=1e-5, rtol=1e-5), (loss_l, ref_l)

    print("KERNEL_OK")
</pallas_src>

<mosaic_0001>
module attributes {stable_mosaic.version = 11 : i64} {
  func.func @_iou_partial_kernel(%arg0: i32, %arg1: memref<4x8x128xf32, #tpu.memory_space<vmem>>, %arg2: memref<4x8x128xf32, #tpu.memory_space<vmem>>, %arg3: memref<1x128xf32, #tpu.memory_space<vmem>>) attributes {dimension_semantics = [#tpu.dimension_semantics<parallel>], iteration_bounds = array<i64: 1>, scalar_prefetch = 0 : i64, scratch_operands = 0 : i64, tpu.core_type = #tpu.core_type<tc>, window_params = [{transform_indices = @transform_0, window_bounds = array<i64: 4, 8, 128>}, {transform_indices = @transform_1, window_bounds = array<i64: 4, 8, 128>}, {transform_indices = @transform_2, window_bounds = array<i64: 1, 128>}]} {
    %c0 = arith.constant 0 : index
    %c0_0 = arith.constant 0 : index
    %c0_1 = arith.constant 0 : index
    %0 = vector.load %arg1[%c0, %c0_0, %c0_1] : memref<4x8x128xf32, #tpu.memory_space<vmem>>, vector<1x8x128xf32>
    %1 = vector.shape_cast %0 : vector<1x8x128xf32> to vector<8x128xf32>
    %c1 = arith.constant 1 : index
    %c0_2 = arith.constant 0 : index
    %c0_3 = arith.constant 0 : index
    %2 = vector.load %arg1[%c1, %c0_2, %c0_3] : memref<4x8x128xf32, #tpu.memory_space<vmem>>, vector<1x8x128xf32>
    %3 = vector.shape_cast %2 : vector<1x8x128xf32> to vector<8x128xf32>
    %c2 = arith.constant 2 : index
    %c0_4 = arith.constant 0 : index
    %c0_5 = arith.constant 0 : index
    %4 = vector.load %arg1[%c2, %c0_4, %c0_5] : memref<4x8x128xf32, #tpu.memory_space<vmem>>, vector<1x8x128xf32>
    %5 = vector.shape_cast %4 : vector<1x8x128xf32> to vector<8x128xf32>
    %c3 = arith.constant 3 : index
    %c0_6 = arith.constant 0 : index
    %c0_7 = arith.constant 0 : index
    %6 = vector.load %arg1[%c3, %c0_6, %c0_7] : memref<4x8x128xf32, #tpu.memory_space<vmem>>, vector<1x8x128xf32>
    %7 = vector.shape_cast %6 : vector<1x8x128xf32> to vector<8x128xf32>
    %c0_8 = arith.constant 0 : index
    %c0_9 = arith.constant 0 : index
    %c0_10 = arith.constant 0 : index
    %8 = vector.load %arg2[%c0_8, %c0_9, %c0_10] : memref<4x8x128xf32, #tpu.memory_space<vmem>>, vector<1x8x128xf32>
    %9 = vector.shape_cast %8 : vector<1x8x128xf32> to vector<8x128xf32>
    %c1_11 = arith.constant 1 : index
    %c0_12 = arith.constant 0 : index
    %c0_13 = arith.constant 0 : index
    %10 = vector.load %arg2[%c1_11, %c0_12, %c0_13] : memref<4x8x128xf32, #tpu.memory_space<vmem>>, vector<1x8x128xf32>
    %11 = vector.shape_cast %10 : vector<1x8x128xf32> to vector<8x128xf32>
    %c2_14 = arith.constant 2 : index
    %c0_15 = arith.constant 0 : index
    %c0_16 = arith.constant 0 : index
    %12 = vector.load %arg2[%c2_14, %c0_15, %c0_16] : memref<4x8x128xf32, #tpu.memory_space<vmem>>, vector<1x8x128xf32>
    %13 = vector.shape_cast %12 : vector<1x8x128xf32> to vector<8x128xf32>
    %c3_17 = arith.constant 3 : index
    %c0_18 = arith.constant 0 : index
    %c0_19 = arith.constant 0 : index
    %14 = vector.load %arg2[%c3_17, %c0_18, %c0_19] : memref<4x8x128xf32, #tpu.memory_space<vmem>>, vector<1x8x128xf32>
    %15 = vector.shape_cast %14 : vector<1x8x128xf32> to vector<8x128xf32>
    %16 = arith.addf %1, %5 : vector<8x128xf32>
    %17 = arith.addf %3, %7 : vector<8x128xf32>
    %18 = arith.addf %9, %13 : vector<8x128xf32>
    %19 = arith.addf %11, %15 : vector<8x128xf32>
    %20 = arith.minimumf %16, %18 : vector<8x128xf32>
    %21 = arith.maximumf %1, %9 : vector<8x128xf32>
    %22 = arith.subf %20, %21 : vector<8x128xf32>
    %23 = arith.minimumf %17, %19 : vector<8x128xf32>
    %24 = arith.maximumf %3, %11 : vector<8x128xf32>
    %25 = arith.subf %23, %24 : vector<8x128xf32>
    %26 = arith.mulf %22, %25 : vector<8x128xf32>
    %cst = arith.constant 0.000000e+00 : f32
    %27 = vector.broadcast %cst : f32 to vector<8x128xf32>
    %28 = arith.maximumf %26, %27 : vector<8x128xf32>
    %29 = arith.mulf %5, %7 : vector<8x128xf32>
    %30 = arith.mulf %13, %15 : vector<8x128xf32>
    %31 = arith.addf %29, %30 : vector<8x128xf32>
    %32 = arith.subf %31, %28 : vector<8x128xf32>
    %cst_20 = arith.constant 9.99999997E-7 : f32
    %33 = vector.broadcast %cst_20 : f32 to vector<8x128xf32>
    %34 = arith.addf %32, %33 : vector<8x128xf32>
    %35 = arith.divf %28, %34 : vector<8x128xf32>
    %cst_21 = arith.constant dense<0.000000e+00> : vector<128xf32>
    %36 = vector.multi_reduction <add>, %35, %cst_21 [0] : vector<8x128xf32> to vector<128xf32>
    %37 = vector.shape_cast %36 : vector<128xf32> to vector<1x128xf32>
    %c0_22 = arith.constant 0 : index
    %c0_23 = arith.constant 0 : index
    %38 = vector.load %arg3[%c0_22, %c0_23] : memref<1x128xf32, #tpu.memory_space<vmem>>, vector<1x128xf32>
    tpu.vector_store %arg3[%c0_22, %c0_23], %37 {strides = array<i32>} : memref<1x128xf32, #tpu.memory_space<vmem>>, vector<1x128xf32>,
    return
  }
  func.func @transform_0(%arg0: i32) -> (i32, i32, i32) {
    %c0_i32 = arith.constant 0 : i32
    %c0_i32_0 = arith.constant 0 : i32
    %c0_i32_1 = arith.constant 0 : i32
    return %c0_i32, %arg0, %c0_i32_0 : i32, i32, i32
  }
  func.func @transform_1(%arg0: i32) -> (i32, i32, i32) {
    %c0_i32 = arith.constant 0 : i32
    %c0_i32_0 = arith.constant 0 : i32
    %c0_i32_1 = arith.constant 0 : i32
    return %c0_i32, %arg0, %c0_i32_0 : i32, i32, i32
  }
  func.func @transform_2(%arg0: i32) -> (i32, i32) {
    %c0_i32 = arith.constant 0 : i32
    %c0_i32_0 = arith.constant 0 : i32
    return %arg0, %c0_i32 : i32, i32
  }
}

</mosaic_0001>

<bundles_post_ra>
// kernel: iou_loss.2
= control target key start
LH: loop header
LB: loop body
LE: loop exit
PB: predicated region body
PF: predicated region fallthrough
CT: control target
= control target key end

     0   :  { %s141_s0 = inlined_call_operand.vmem [shape: f32[1,4,8,128], index: 0, kind: input, shape index: {}]   ;;  %s142_s1 = inlined_call_operand.vmem [shape: f32[1,4,8,128], index: 1, kind: input, shape index: {}]   ;;  %s143_s2 = inlined_call_operand.vmem [shape: f32[1,128], index: 2, kind: output, shape index: {}]  }
   0x1   :  { %v11_v0 = vld [vmem:[%s142_s1] sm:$0xff]  ;;  %v91_v1 = vld [vmem:[%s142_s1 + $0x8] sm:$0xff]  ;;  %v92_v2 = vld [vmem:[%s142_s1 + $0x10] sm:$0xff] }
   0x2   :  { %v93_v3 = vld [vmem:[%s142_s1 + $0x18] sm:$0xff]  ;;  %v29_v4 = vld [vmem:[%s141_s0] sm:$0xff]  ;;  %v94_v5 = vld [vmem:[%s141_s0 + $0x8] sm:$0xff]  ;;  %v61_v6 = vadd.f32 %v92_v2, %v11_v0 }
   0x3   :  { %v95_v7 = vld [vmem:[%s141_s0 + $0x10] sm:$0xff]  ;;  %v96_v8 = vld [vmem:[%s141_s0 + $0x18] sm:$0xff]  ;;  %v62_v9 = vadd.f32 %v93_v3, %v91_v1  ;;  %v66_v12 = vmax.f32 %v11_v0, %v29_v4  ;;  %v69_v13 = vmax.f32 %v91_v1, %v94_v5  ;;  %v73_v16 = vmul.f32 %v93_v3, %v92_v2 }
   0x4   :  { %v63_v10 = vadd.f32 %v95_v7, %v29_v4  ;;  %v64_v11 = vadd.f32 %v96_v8, %v94_v5  ;;  %v74_v17 = vmul.f32 %v96_v8, %v95_v7 }
   0x6   :  { %v65_v14 = vmin.f32 %v61_v6, %v63_v10  ;;  %v68_v15 = vmin.f32 %v62_v9, %v64_v11  ;;  %v75_v21 = vadd.f32 %v74_v17, %v73_v16 }
   0x8   :  { %v67_v18 = vsub.f32 %v65_v14, %v66_v12  ;;  %v70_v19 = vsub.f32 %v68_v15, %v69_v13 }
   0xa   :  { %v71_v20 = vmul.f32 %v70_v19, %v67_v18 }
   0xc   :  { %v72_v22 = vmax.f32 %v71_v20, 0.0 }
   0xe   :  { %v76_v23 = vsub.f32 %v75_v21, %v72_v22 }
  0x10   :  { %v77_v24 = vadd.f32 1e-06, %v76_v23 }
  0x12   :  { %97 = vrcp.f32 %v77_v24 }
  0x1c   :  { %v98_v25 = vpop.eup %97 }
  0x1d   :  { %v79_v26 = vmul.f32 %v98_v25, %v72_v22 }
  0x1f   :  { %v80_v27 = vrot.slane %v79_v26, 4 }
  0x21   :  { %v81_v28 = vadd.f32 %v80_v27, %v79_v26 }
  0x23   :  { %v82_v29 = vrot.slane %v81_v28, 2 }
  0x25   :  { %v83_v30 = vadd.f32 %v82_v29, %v81_v28 }
  0x27   :  { %v84_v31 = vrot.slane %v83_v30, 1 }
  0x29   :  { %v85_v32 = vadd.f32 %v84_v31, %v83_v30 }
  0x2b   :  { %86 = vst [vmem:[%s143_s2] sm:$0x1] %v85_v32 }

</bundles_post_ra>
